<compile_context>
chip_gen: v6e
topology: v6e:2x2x1
jax: 0.10.0
libtpu: 0.0.40
codegen_flags: <defaults>
</compile_context>

<pallas_src>
import functools

import jax
import jax.numpy as jnp
from jax import lax
from jax.experimental import pallas as pl
from jax.experimental.pallas import tpu as pltpu

LANES = 128                      # vreg lane width
SUBLANES = 8                     # vreg sublane count
TILE = SUBLANES * LANES          # 1024 elements
# Live VMEM budget for the pipelined input buffers
# (2 inputs x 2 pipeline buffers x block bytes).  16 MiB keeps DMAs large
# enough that the ~0.35 us/step overhead is <10% at v7x HBM speed while
# fitting comfortably under a 32 MiB scoped limit on v5e/v6e/v7x
# (v7x physical VMEM is 64 MiB).
TARGET_LIVE_BYTES = 16 * 1024 * 1024


def _cdiv(a, b):
    return -(-a // b)


def _round_up(x, m):
    return _cdiv(x, m) * m


# ----------------------------------------------------------------------------
# Pallas kernel: per-block partial sum of squared differences.
# Each grid step reduces a (block_rows, 128) tile of (o - t)^2 to an (8, 128)
# partial using only vreg-aligned VPU adds (no cross-lane work, no serial
# scalar accumulation).  Final reduction + mean normalization happens in the
# JAX wrapper.
# ----------------------------------------------------------------------------
def _partial_sqerr_kernel(o_ref, t_ref, out_ref, *, valid_rows, needs_mask):
    block_rows, lanes = o_ref.shape

    d = o_ref[...].astype(jnp.float32) - t_ref[...].astype(jnp.float32)
    sq = d * d

    def _reduce(x):
        # (block_rows,128) -> (block_rows//8, 8, 128) -> sum over axis 0:
        # vreg-granular adds only; lane-dense (8,128) partial output.
        return jnp.sum(x.reshape(block_rows // SUBLANES, SUBLANES, lanes),
                       axis=0)

    if not needs_mask:
        # Every block (including the last) is fully in-bounds: pure streaming
        # path, no mask cost anywhere.
        out_ref[...] = _reduce(sq)
    else:
        # Only the last block can run past the array; gate the mask to it so
        # all other blocks stay on the unmasked path (keeps the bf16 path
        # HBM-bound instead of VALU-bound).
        i = pl.program_id(0)
        last = pl.num_programs(0) - 1

        @pl.when(i != last)
        def _():
            out_ref[...] = _reduce(sq)

        @pl.when(i == last)
        def _():
            # Out-of-bounds rows of the last block hold undefined VMEM.  A
            # row-granular select (jnp.where, not a multiply) zeroes them even
            # if they are NaN/Inf.  All quantities here are block-local row
            # counts (< block_rows), so int32 never overflows.
            rows_left = valid_rows - i * block_rows
            row = lax.broadcasted_iota(jnp.int32, (block_rows, lanes), 0)
            out_ref[...] = _reduce(jnp.where(row < rows_left, sq, 0.0))


def mse_loss_pallas(outputs, targets):
    """MSELoss(reduction='mean') via a Pallas TPU kernel."""
    assert outputs.shape == targets.shape, (outputs.shape, targets.shape)
    n_elems = outputs.size
    if n_elems == 0:
        return jnp.float32(jnp.nan)   # torch MSELoss(mean) on empty input

    o = outputs.reshape(-1)
    t = targets.reshape(-1)

    # Split into a (8*128)-aligned prefix handled by the kernel and a <1024
    # element tail handled by plain jnp.  No O(N) jnp.pad copy of the inputs;
    # in the common (aligned) case there is no slice at all.
    n_main = (n_elems // TILE) * TILE
    total = jnp.zeros((), jnp.float32)

    if n_main > 0:
        rows = n_main // LANES                     # multiple of 8
        if n_main == n_elems:
            o2 = o.reshape(rows, LANES)
            t2 = t.reshape(rows, LANES)
        else:
            # Rare non-aligned case: prefix slice (may materialize a copy of
            # the prefix in XLA, still cheaper than padding both arrays).
            o2 = o[:n_main].reshape(rows, LANES)
            t2 = t[:n_main].reshape(rows, LANES)

        # Byte-budget block sizing: bf16 inputs get 2x the rows of f32 for the
        # same VMEM footprint, keeping DMAs large and the per-step-overhead
        # fraction constant across dtypes.
        per_row_bytes = LANES * (o2.dtype.itemsize + t2.dtype.itemsize)
        budget_rows = max(
            SUBLANES,
            (TARGET_LIVE_BYTES // (2 * per_row_bytes)) // SUBLANES * SUBLANES)

        if rows <= budget_rows:
            # Whole prefix fits in one budget block: split into two balanced
            # blocks when possible so both v7x TensorCores get work.
            if rows >= 2 * SUBLANES:
                block_rows = _round_up(_cdiv(rows, 2), SUBLANES)
            else:
                block_rows = rows
        elif rows <= 2 * budget_rows:
            # Mid-size: two balanced blocks instead of one full + one stub.
            block_rows = _round_up(_cdiv(rows, 2), SUBLANES)
        else:
            block_rows = budget_rows

        num_blocks = _cdiv(rows, block_rows)
        covered_rows = num_blocks * block_rows
        # Mask is needed only when the last block genuinely runs out of
        # bounds of the (exactly valid) prefix.
        needs_mask = covered_rows != rows

        kernel = functools.partial(
            _partial_sqerr_kernel, valid_rows=rows, needs_mask=needs_mask)

        in_bytes = n_main * (o2.dtype.itemsize + t2.dtype.itemsize)
        partials = pl.pallas_call(
            kernel,
            out_shape=jax.ShapeDtypeStruct((num_blocks * SUBLANES, LANES),
                                           jnp.float32),
            grid_spec=pltpu.PrefetchScalarGridSpec(
                num_scalar_prefetch=0,
                grid=(num_blocks,),
                in_specs=[
                    pl.BlockSpec((block_rows, LANES), lambda i: (i, 0)),
                    pl.BlockSpec((block_rows, LANES), lambda i: (i, 0)),
                ],
                out_specs=pl.BlockSpec((SUBLANES, LANES), lambda i: (i, 0)),
            ),
            compiler_params=pltpu.CompilerParams(
                # Independent per-block partials -> fully parallel grid (both
                # v7x TensorCores stream HBM; free on v5e/v6e).
                dimension_semantics=("parallel",),
                # 2 inputs x 2 buffers x <=4 MiB = <=16 MiB live; explicit
                # limit is required on v5e (16 MiB scoped default) and safe on
                # v6e/v7x.
                vmem_limit_bytes=32 * 1024 * 1024,
            ),
            cost_estimate=pl.CostEstimate(
                flops=3 * n_main,
                bytes_accessed=in_bytes + num_blocks * SUBLANES * LANES * 4,
                transcendentals=0,
            ),
        )(o2, t2)
        total = total + jnp.sum(partials)

    if n_main != n_elems:
        # <1024-element tail: negligible work, plain jnp.
        dt = o[n_main:].astype(jnp.float32) - t[n_main:].astype(jnp.float32)
        total = total + jnp.sum(dt * dt)

    return total * jnp.float32(1.0 / n_elems)


# ----------------------------------------------------------------------------
# Criterion + PartialCriterion wrapper (JAX-side equivalents of the torch code)
# ----------------------------------------------------------------------------
class PallasMSECriterion:
    """MSELoss(reduction='mean') backed by the Pallas kernel above."""
    reduction = "mean"

    def __call__(self, outputs, targets):
        return mse_loss_pallas(outputs, targets)


def dict_walk(sources, path):
    """Walk a nested dict by a list of keys (FlexBricks dict_walk)."""
    node = sources
    for key in path:
        node = node[key]
    return node


class PartialCriterion:
    # Pure Python host-side glue; no kernel needed for the path selection.
    def __init__(self, criterion, output_path=None, target_path=None):
        self._criterion = criterion
        self._output_path = output_path.split(".") if output_path is not None else None
        self._target_path = target_path.split(".") if target_path is not None else None
        self.reduction = self._criterion.reduction

    def __call__(self, outputs, targets):
        sources = {"output": outputs, "target": targets}
        if self._output_path is not None:
            outputs = dict_walk(sources, self._output_path)
        if self._target_path is not None:
            targets = dict_walk(sources, self._target_path)
        return self._criterion(outputs, targets)

    # Alias to mirror torch.nn.Module.forward
    forward = __call__


# ----------------------------------------------------------------------------
# Demo
# ----------------------------------------------------------------------------
if __name__ == "__main__":
    key = jax.random.PRNGKey(0)
    k1, k2 = jax.random.split(key)

    # NCHW, small shapes: batch=2, channels=4, spatial=16x16 (tile-aligned).
    pred = jax.random.normal(k1, (2, 4, 16, 16), dtype=jnp.float32)
    label = jax.random.normal(k2, (2, 4, 16, 16), dtype=jnp.float32)

    # Nested dict inputs exercised through output_path / target_path walking.
    outputs = {"pred": pred, "aux": {"unused": jnp.zeros((1,))}}
    targets = {"label": label}

    criterion = PartialCriterion(
        PallasMSECriterion(),
        output_path="output.pred",
        target_path="target.label",
    )

    loss = criterion(outputs, targets)
    jax.block_until_ready(loss)
    ref = jnp.mean((pred - label) ** 2)
    assert jnp.allclose(loss, ref, rtol=1e-5, atol=1e-6), (loss, ref)

    # Non-(8*128)-aligned size: exercises the jnp tail path (no pad copy).
    k3, k4 = jax.random.split(k1)
    a = jax.random.normal(k3, (3, 5, 7, 11), dtype=jnp.float32)   # 1155 elems
    b = jax.random.normal(k4, (3, 5, 7, 11), dtype=jnp.float32)
    loss2 = mse_loss_pallas(a, b)
    jax.block_until_ready(loss2)
    ref2 = jnp.mean((a - b) ** 2)
    assert jnp.allclose(loss2, ref2, rtol=1e-5, atol=1e-6), (loss2, ref2)

    # Partial (out-of-bounds) last block: 24 rows split into 2x16-row blocks,
    # exercising the pl.when-gated in-kernel mask.
    k5, k6 = jax.random.split(k2)
    c = jax.random.normal(k5, (3, 1024), dtype=jnp.float32)       # 3072 elems
    d = jax.random.normal(k6, (3, 1024), dtype=jnp.float32)
    loss3 = mse_loss_pallas(c, d)
    jax.block_until_ready(loss3)
    ref3 = jnp.mean((c - d) ** 2)
    assert jnp.allclose(loss3, ref3, rtol=1e-5, atol=1e-6), (loss3, ref3)

    # bf16 inputs: native-dtype reads, f32 accumulation in-kernel.
    e = jax.random.normal(k5, (2, 8, 128), dtype=jnp.bfloat16)    # 2048 elems
    f = jax.random.normal(k6, (2, 8, 128), dtype=jnp.bfloat16)
    loss4 = mse_loss_pallas(e, f)
    jax.block_until_ready(loss4)
    ref4 = jnp.mean((e.astype(jnp.float32) - f.astype(jnp.float32)) ** 2)
    assert jnp.allclose(loss4, ref4, rtol=1e-3, atol=1e-4), (loss4, ref4)

    print("KERNEL_OK")
</pallas_src>

<mosaic_0001>
module attributes {stable_mosaic.version = 11 : i64} {
  func.func @_partial_sqerr_kernel(%arg0: i32, %arg1: memref<8x128xf32, #tpu.memory_space<vmem>>, %arg2: memref<8x128xf32, #tpu.memory_space<vmem>>, %arg3: memref<8x128xf32, #tpu.memory_space<vmem>>) attributes {dimension_semantics = [#tpu.dimension_semantics<parallel>], iteration_bounds = array<i64: 2>, scalar_prefetch = 0 : i64, scratch_operands = 0 : i64, tpu.core_type = #tpu.core_type<tc>, window_params = [{transform_indices = @transform_0, window_bounds = array<i64: 8, 128>}, {transform_indices = @transform_1, window_bounds = array<i64: 8, 128>}, {transform_indices = @transform_2, window_bounds = array<i64: 8, 128>}]} {
    %c0 = arith.constant 0 : index
    %c0_0 = arith.constant 0 : index
    %0 = vector.load %arg1[%c0, %c0_0] : memref<8x128xf32, #tpu.memory_space<vmem>>, vector<8x128xf32>
    %c0_1 = arith.constant 0 : index
    %c0_2 = arith.constant 0 : index
    %1 = vector.load %arg2[%c0_1, %c0_2] : memref<8x128xf32, #tpu.memory_space<vmem>>, vector<8x128xf32>
    %2 = arith.subf %0, %1 : vector<8x128xf32>
    %3 = arith.mulf %2, %2 : vector<8x128xf32>
    %4 = vector.shape_cast %3 : vector<8x128xf32> to vector<1x8x128xf32>
    %cst = arith.constant dense<0.000000e+00> : vector<8x128xf32>
    %5 = vector.multi_reduction <add>, %4, %cst [0] : vector<1x8x128xf32> to vector<8x128xf32>
    %c0_3 = arith.constant 0 : index
    %c0_4 = arith.constant 0 : index
    %6 = vector.load %arg3[%c0_3, %c0_4] : memref<8x128xf32, #tpu.memory_space<vmem>>, vector<8x128xf32>
    tpu.vector_store %arg3[%c0_3, %c0_4], %5 {strides = array<i32>} : memref<8x128xf32, #tpu.memory_space<vmem>>, vector<8x128xf32>,
    return
  }
  func.func @transform_0(%arg0: i32) -> (i32, i32) {
    %c0_i32 = arith.constant 0 : i32
    %c0_i32_0 = arith.constant 0 : i32
    return %arg0, %c0_i32 : i32, i32
  }
  func.func @transform_1(%arg0: i32) -> (i32, i32) {
    %c0_i32 = arith.constant 0 : i32
    %c0_i32_0 = arith.constant 0 : i32
    return %arg0, %c0_i32 : i32, i32
  }
  func.func @transform_2(%arg0: i32) -> (i32, i32) {
    %c0_i32 = arith.constant 0 : i32
    %c0_i32_0 = arith.constant 0 : i32
    return %arg0, %c0_i32 : i32, i32
  }
}

</mosaic_0001>

<bundles_post_ra>
// kernel: tpu_custom_call.1
= control target key start
LH: loop header
LB: loop body
LE: loop exit
PB: predicated region body
PF: predicated region fallthrough
CT: control target
= control target key end

     0   :  { %7 = vsyncpa [#allocation3], 0  ;;  %s713_s0 = inlined_call_operand.hbm [shape: f32[16,128], index: 0, kind: input, shape index: {}]   ;;  %s714_s1 = inlined_call_operand.hbm [shape: f32[16,128], index: 1, kind: input, shape index: {}]   ;;  %s715_s2 = inlined_call_operand.hbm [shape: f32[16,128], index: 2, kind: output, shape index: {}]  }
   0x1   :  { %9 = vsyncpa [#allocation3 + $0x1], 0 }
   0x2   :  { %10 = vsyncpa [#allocation6], 0 }
   0x3   :  { %12 = vsyncpa [#allocation6 + $0x1], 0 }
   0x4   :  { %13 = vsyncpa [#allocation4], 0 }
   0x5   :  { %15 = vsyncpa [#allocation4 + $0x1], 0  ;;  %s519_s9 = smov 0   ;;  %s521_s10 = smov 0  }
   0x6   :  { %s523_s11 = smov 0   ;;  %s525_s12 = smov 0  }
   0x7 LB: > { %s540_s13 = sadd.s32 4294967295, %s499_s12   ;;  %s309_s14 = sadd.s32 4294967294, %s499_s12   ;;  %s499_s12 = sphi %s525_s12, %s734_s12   ;;  %s495_s11 = sphi %s523_s11, %s733_s11   ;;  %s491_s10 = sphi %s521_s10, %s732_s10   ;;  %s487_s9 = sphi %s519_s9, %s731_s9  }
   0x8   : > { %s544_s15 = sadd.s32 1, %s499_s12   ;;  %s28_s16 = sadd.s32 1, %s495_s11 }
   0x9   : > { %s25_s17 = ssub.s32 %s499_s12, %s544_s15  ;;  %p35_p0 = scmp.ne.s32.totalorder %s495_s11, %s491_s10 }
   0xa   : > { %p26_p1 = scmp.eq.s32.totalorder %s25_s17, 0  ;;  %p36_p2 = scmp.eq.s32.totalorder %s499_s12, 0 }
   0xb   : > { %p41_p3 = scmp.ne.s32.totalorder %s491_s10, %s487_s9  ;;  %p42_p4 = scmp.eq.s32.totalorder %s540_s13, 0 }
   0xc   : > { %s556_s18 = scalar_select %p26_p1, %s495_s11, %s28_s16  }
   0xd   : > { %p558_p5 = por %p36_p2, %p35_p0  ;;  %p562_p6 = por %p42_p4, %p41_p3 }
   0xe   : > { %p91_p7 = scmp.eq.s32.totalorder %s540_s13, 1  ;;  %p97_p8 = scmp.eq.s32.totalorder %s309_s14, 1 }
   0xf   : > { %s719_s20 = scalar_select %p562_p6, 1, 0 }
  0x10   : > { %p341_p10 = scmp.lt.s32.totalorder %s499_s12, 2  ;;  %p569_p11 = por %p91_p7, %p35_p0 }
  0x11   : > { %p573_p12 = por %p97_p8, %p41_p3  ;;  %s578_s23 = sand.u32 1, %s495_s11  }
  0x12   : > { %s720_s21 = scalar_select %p569_p11, 1, 0 }
  0x13   : > { %s721_s22 = scalar_select %p573_p12, 1, 0 }
  0x14   : > { %s313_s24 = sshll.u32 %s499_s12, 7  ;;  %s312_s25 = sshll.u32 %s578_s23, 3 }
  0x15   : > { %s587_s28 = scalar_lea.hbm %s713_s0, %s313_s24  ;;  %s121_s29 = scalar_lea.vmem [#allocation2], %s312_s25 }
  0x16   : > { %s128_s30 = sshll.u32 %s121_s29, 4  ;;  %p593_p13 = pnand %p341_p10, %p558_p5  ;;  %s597_s30 = int_to_ptr.vmem [resolvable:$true] %s128_s30 }
  0x17   : > { %s118_s4 = scalar_lea.sflag [#allocation3], %s578_s23  ;;  %s375_s5 = scalar_lea.hbm %s587_s28, 128 }
  0x18   : > { %p376_p2 = scmp.ne.s32.totalorder %s587_s28, %s375_s5  ;;  %p377_p3 = pneg %p593_p13 }
  0x19   : > { %s380_s8 = scalar_lea.hbm %s713_s0, 256  ;;  %p381_p5 = scmp.lt.s32.totalorder %s587_s28, %s713_s0 }
  0x1a   : > { %p378_p4 = pnand %p377_p3, %p376_p2  ;;  %p382_p8 = scmp.lt.s32.totalorder %s380_s8, %s375_s5 }
  0x1c   : > { %p379_p7 = pneg %p378_p4  ;;  %p383_p10 = por %p382_p8, %p381_p5 }
  0x1e   : > { %p384_p9 = pnand %p383_p10, %p379_p7 }
  0x20   : > { %387 = shalt.err (!%p384_p9)
}
  0x21   : > { %s388_s17 = scalar_lea.vmem %s597_s30, 128  ;;  %s501_s19 = smov [#allocation2]  }
  0x22   : > { %p389_p0 = scmp.ne.s32.totalorder %s597_s30, %s388_s17  ;;  %s393_s26 = sshll.u32 %s501_s19, 4  ;;  %s394_s26 = int_to_ptr.vmem [resolvable:$false] %s393_s26 }
  0x23   : > { %s395_s27 = scalar_lea.vmem %s394_s26, 256  ;;  %p396_p1 = scmp.lt.s32.totalorder %s597_s30, %s394_s26 }
  0x24   : > { %p391_p2 = pnand %p389_p0, %p377_p3  ;;  %p397_p12 = scmp.lt.s32.totalorder %s395_s27, %s388_s17 }
  0x26   : > { %p392_p4 = pneg %p391_p2  ;;  %p398_p11 = por %p397_p12, %p396_p1 }
  0x28   : > { %p399_p5 = pnand %p398_p11, %p392_p4 }
  0x2a   : > { %402 = shalt.err (!%p399_p5)
}
  0x2b   : > { %333 = dma.hbm_to_vmem [thread:$0]  (!%p593_p13), %s587_s28, 128, %s597_s30, %s118_s4  }
  0x2c   : > { %p723_p9 = scmp.lt.s32.totalorder %s499_s12, 3  ;;  %p724_p0 = scmp.ge.s32.totalorder %s499_s12, 1 }
  0x2d   : > { %s639_s7 = scalar_lea.hbm %s714_s1, %s313_s24  ;;  %s139_s8 = scalar_lea.vmem [#allocation5], %s312_s25 }
  0x2e   : > { %p630_p7 = pnand %p724_p0, %p723_p9  ;;  %s146_s14 = sshll.u32 %s139_s8, 4  ;;  %s147_s14 = int_to_ptr.vmem [resolvable:$true] %s146_s14 }
  0x2f   : > { %s136_s28 = scalar_lea.sflag [#allocation6], %s578_s23  ;;  %s403_s30 = scalar_lea.hbm %s639_s7, 128 }
  0x30   : > { %s725_s29 = scalar_select %p630_p7, 1, 0 }
  0x31   : > { %p404_p11 = scmp.ne.s32.totalorder %s639_s7, %s403_s30  ;;  %s408_s17 = scalar_lea.hbm %s714_s1, 256 }
  0x32   : > { %p409_p8 = scmp.lt.s32.totalorder %s639_s7, %s714_s1  ;;  %p410_p10 = scmp.lt.s32.totalorder %s408_s17, %s403_s30 }
  0x33   : > { %p406_p12 = pnand %p404_p11, %p377_p3 }
  0x34   : > { %p411_p2 = por %p410_p10, %p409_p8 }
  0x35   : > { %p407_p1 = pneg %p406_p12 }
  0x37   : > { %p412_p4 = pnand %p411_p2, %p407_p1 }
  0x39   : > { %415 = shalt.err (!%p412_p4)
}
  0x3a   : > { %s416_s25 = scalar_lea.vmem %s147_s14, 128  ;;  %s502_s23 = smov [#allocation5]  }
  0x3b   : > { %p417_p5 = scmp.ne.s32.totalorder %s147_s14, %s416_s25  ;;  %s421_s26 = sshll.u32 %s502_s23, 4  ;;  %s422_s26 = int_to_ptr.vmem [resolvable:$false] %s421_s26 }
  0x3c   : > { %s423_s27 = scalar_lea.vmem %s422_s26, 256  ;;  %p424_p11 = scmp.lt.s32.totalorder %s147_s14, %s422_s26 }
  0x3d   : > { %p419_p9 = pnand %p417_p5, %p377_p3  ;;  %p425_p12 = scmp.lt.s32.totalorder %s423_s27, %s416_s25 }
  0x3f   : > { %p420_p0 = pneg %p419_p9  ;;  %p426_p6 = por %p425_p12, %p424_p11 }
  0x41   : > { %p427_p7 = pnand %p426_p6, %p420_p0 }
  0x43   : > { %430 = shalt.err (!%p427_p7)
}
  0x44   : > { %336 = dma.hbm_to_vmem [thread:$0]  (!%p593_p13), %s639_s7, 128, %s147_s14, %s136_s28  }
  0x45   : > { %p726_p1 = scmp.ne.s32.totalorder %s725_s29, 0 }
  0x46   : > { %s665_s5 = sand.u32 (!%p726_p1), 1, %s491_s10   ;;  %p727_p3 = scmp.ne.s32.totalorder (!%p726_p1), %s719_s20, 0 }
  0x47   : > { %155 = sbr.rel (%p726_p1) target bundleno = 104 (0x68), region = 28  ;;  %s317_s6 = sshll.u32 (!%p726_p1), %s665_s5, 3 }
  0x48   : > { %s158_s8 = scalar_lea.sflag (!%p726_p1), [#allocation3], %s665_s5  ;;  %s161_s30 = scalar_lea.vmem (!%p726_p1), [#allocation2], %s317_s6 }
  0x4c   : > { %474 = dma.done.wait (%p727_p3), %s158_s8, 128  }
  0x4d   : > { %476 = vsyncadd (%p727_p3), %s158_s8, 4294967168  ;;  %s167_s3 = scalar_lea.sflag [#allocation6], %s665_s5  ;;  %s170_s7 = scalar_lea.vmem [#allocation5], %s317_s6 }
  0x4e   : > { %478 = dma.done.wait (%p727_p3), %s167_s3, 128  }
  0x4f   : > { %480 = vsyncadd (%p727_p3), %s167_s3, 4294967168  ;;  %v196_v0 = vld [vmem:[%s161_s30] sm:$0xff]  ;;  %v197_v1 = vld [vmem:[%s170_s7] sm:$0xff]  ;;  %s195_s29 = scalar_lea.vmem [#allocation7], %s317_s6  ;;  %s321_s28 = sshll.u32 %s540_s13, 7 }
  0x50   : > { %s216_s14 = sshll.u32 %s195_s29, 4  ;;  %v198_v2 = vsub.f32 %v196_v0, %v197_v1  ;;  %s214_s17 = scalar_lea.hbm %s715_s2, %s321_s28  ;;  %s217_s14 = int_to_ptr.vmem [resolvable:$true] %s216_s14 }
  0x51   : > { %s203_s24 = scalar_lea.sflag [#allocation4], %s665_s5  ;;  %s431_s19 = scalar_lea.vmem %s217_s14, 128 }
  0x52   : > { %v199_v3 = vmul.f32 %v198_v2, %v198_v2  ;;  %p432_p6 = scmp.ne.s32.totalorder %s217_s14, %s431_s19  ;;  %p728_p13 = scmp.ne.s32.totalorder %s720_s21, 0 }
  0x53   : > { %s503_s20 = smov [#allocation7]  }
  0x54   : > { %201 = vst [vmem:[%s195_s29] sm:$0xff] %v199_v3  ;;  %p433_p7 = pnand %p432_p6, %p728_p13  ;;  %s435_s25 = sshll.u32 %s503_s20, 4  ;;  %s436_s25 = int_to_ptr.vmem [resolvable:$false] %s435_s25 }
  0x55   : > { %s437_s23 = scalar_lea.vmem %s436_s25, 256  ;;  %p438_p10 = scmp.lt.s32.totalorder %s217_s14, %s436_s25 }
  0x56   : > { %p434_p8 = pneg %p433_p7  ;;  %p439_p2 = scmp.lt.s32.totalorder %s437_s23, %s431_s19 }
  0x58   : > { %p440_p4 = por %p439_p2, %p438_p10 }
  0x5a   : > { %p441_p5 = pnand %p440_p4, %p434_p8 }
  0x5c   : > { %444 = shalt.err (!%p441_p5)
}
  0x5d   : > { %s445_s13 = scalar_lea.hbm %s214_s17, 128  ;;  %s449_s5 = scalar_lea.hbm %s715_s2, 256 }
  0x5e   : > { %p446_p9 = scmp.ne.s32.totalorder %s214_s17, %s445_s13  ;;  %p450_p12 = scmp.lt.s32.totalorder %s214_s17, %s715_s2 }
  0x5f   : > { %p451_p1 = scmp.lt.s32.totalorder %s449_s5, %s445_s13 }
  0x60   : > { %p447_p0 = pnand %p446_p9, %p728_p13 }
  0x61   : > { %p452_p3 = por %p451_p1, %p450_p12 }
  0x62   : > { %p448_p11 = pneg %p447_p0 }
  0x64   : > { %p453_p6 = pnand %p452_p3, %p448_p11 }
  0x66   : > { %456 = shalt.err (!%p453_p6)
}
  0x67   : > { %328 = dma.vmem_to_hbm [thread:$0]  (%p728_p13), %s217_s14, 128, %s214_s17, %s203_s24  }
  0x68 PF: > { %s228_s30 = sand.u32 1, %s487_s9   ;;  %p729_p7 = scmp.ne.s32.totalorder %s721_s22, 0 }
  0x69   : > { %p730_p8 = scmp.ge.s32.totalorder %s499_s12, 2  ;;  %s229_s3 = scalar_lea.sflag [#allocation4], %s228_s30 }
  0x6b   : > { %p338_p10 = pnand %p730_p8, %p729_p7 }
  0x6d   : > { %p339_p2 = pneg %p338_p10 }
  0x6f   : > { %482 = dma.done.wait (%p339_p2), %s229_s3, 128  }
  0x70   : > { %484 = vsyncadd (%p339_p2), %s229_s3, 4294967168  ;;  %p18_p4 = scmp.ge.s32.totalorder %s544_s15, 4   ;;  %s731_s9 = smov %s491_s10 }
  0x71   : > { %s732_s10 = smov %s495_s11  ;;  %s733_s11 = smov %s556_s18 }
  0x72   : > { %s734_s12 = smov %s544_s15  ;;  %20 = sbr.rel (!%p18_p4) target bundleno = 7 (0x7), region = 86 }
  0x77   :  { %234 = vsyncpa [#allocation3], 1 }
  0x78   :  { %236 = vsyncpa [#allocation3 + $0x1], 1 }
  0x79   :  { %237 = vsyncpa [#allocation6], 1 }
  0x7a   :  { %239 = vsyncpa [#allocation6 + $0x1], 1 }
  0x7b   :  { %240 = vsyncpa [#allocation4], 1 }
  0x7c   :  { %242 = vsyncpa [#allocation4 + $0x1], 1 }

</bundles_post_ra>
